<compile_context>
chip_gen: v7x
topology: tpu7x:2x2x1
jax: 0.10.0
libtpu: 0.0.40
codegen_flags: <defaults>
</compile_context>

<pallas_src>
import functools

import jax
import jax.numpy as jnp
from jax import lax
from jax.experimental import pallas as pl
from jax.experimental.pallas import tpu as pltpu

EPS = 1e-5
COUT = 8
CIN = 3

# Tile sizes along the P (lane) axis.  If P is smaller than the tile we fall
# back to a single full-extent block (always legal for BlockSpec).
TP_A = 8192     # kernel A
TP_B = 8192     # kernel B
TQ_C = 4096     # kernel C (rows of the regrouped (P, 64) array)


def _tile(p, t):
    return p if p <= t else t


# ----------------------------------------------------------------------------
# Kernel A: fused convs (single matmul) + relu + single-pass BN statistics
# ----------------------------------------------------------------------------
def _conv_bn_stats_kernel(xc_ref, w_ref, b_ref,
                          v4_ref, v8_ref, mean_ref, istd_ref,
                          *, p_total, tp):
    i = pl.program_id(0)

    # One MXU matmul for conv1..conv4: (16, 6) @ (6, tp) + bias.
    y = jnp.dot(w_ref[...], xc_ref[...],
                preferred_element_type=jnp.float32) + b_ref[...]
    v3 = y[0:COUT, :]
    v8 = y[COUT:2 * COUT, :]
    v4_ref[...] = jnp.maximum(v3, 0.0)          # relu1
    v8_ref[...] = v8

    # bn3 training-mode batch statistics (gamma=1, beta=0, biased variance),
    # single pass (sum + sum-of-squares).  Mask lanes past the true extent P
    # so a boundary tile never pollutes the statistics.
    col = lax.broadcasted_iota(jnp.int32, v8.shape, 1)
    v8m = jnp.where(col < (p_total - i * tp), v8, 0.0)
    s = jnp.sum(v8m, axis=1, keepdims=True)         # (8, 1)
    sq = jnp.sum(v8m * v8m, axis=1, keepdims=True)  # (8, 1)

    @pl.when(i == 0)
    def _():
        mean_ref[...] = jnp.zeros_like(mean_ref)
        istd_ref[...] = jnp.zeros_like(istd_ref)

    mean_ref[...] += s
    istd_ref[...] += sq

    @pl.when(i == pl.num_programs(0) - 1)
    def _():
        mu = mean_ref[...] / p_total
        var = istd_ref[...] / p_total - mu * mu
        mean_ref[...] = mu
        istd_ref[...] = lax.rsqrt(var + EPS)


# ----------------------------------------------------------------------------
# Kernel B: apply BN (v9) and build the s1 broadcast product
#   m[a*8 + b, p] = v4[b, p] * v9[a, p]      (p on lanes -> lane-dense stores)
# ----------------------------------------------------------------------------
def _bn_apply_s1_kernel(v4_ref, v8_ref, mean_ref, istd_ref, v9_ref, m_ref):
    v4 = v4_ref[...]                                      # (8, tp)
    v9 = (v8_ref[...] - mean_ref[...]) * istd_ref[...]    # (8, tp)
    v9_ref[...] = v9
    for a in range(COUT):                                 # static unroll
        m_ref[pl.ds(a * COUT, COUT), :] = v4 * v9[a:a + 1, :]


# ----------------------------------------------------------------------------
# Kernel C: grouped reduction + div + tanh over the regrouped (P, 64) array
# ----------------------------------------------------------------------------
def _reduce_tanh_kernel(reg_ref, z_ref, *, k):
    s = reg_ref[...]                                      # (tq, 64)
    z_ref[...] = jnp.tanh(jnp.sum(s, axis=1, keepdims=True) / k)


# ----------------------------------------------------------------------------
# Wrapper
# ----------------------------------------------------------------------------
def init_params(key):
    ks = jax.random.split(key, 7)
    bound = 1.0 / jnp.sqrt(float(CIN))            # fan_in = Cin * 1 * 1

    def u(k, shape):
        return jax.random.uniform(k, shape, jnp.float32, -bound, bound)

    return {
        "w1": u(ks[0], (COUT, CIN, 1, 1)), "b1": u(ks[1], (COUT,)),
        "w2": u(ks[2], (COUT, CIN, 1, 1)), "b2": u(ks[3], (COUT,)),
        "w3": u(ks[4], (COUT, CIN, 1, 1)),                      # no bias
        "w4": u(ks[5], (COUT, CIN, 1, 1)), "b4": u(ks[6], (COUT,)),
    }


@jax.jit
def forward(x1, x2, params):
    N, Cin, H, W = x1.shape
    assert N == 1 and Cin == CIN
    Ho, Wo = H + 2, W + 2                    # 1x1 conv, stride 1, padding 1
    P = Ho * Wo

    def to_rows(x):                          # (1,3,H,W) -> (3, P), reshape only
        xp = jnp.pad(x, ((0, 0), (0, 0), (1, 1), (1, 1)))
        return xp.reshape(CIN, P)

    xcat = jnp.concatenate([to_rows(x1), to_rows(x2)], axis=0)        # (6, P)
    w1 = params["w1"][:, :, 0, 0]
    w2 = params["w2"][:, :, 0, 0]
    w3 = params["w3"][:, :, 0, 0]
    w4 = params["w4"][:, :, 0, 0]
    wcat = jnp.concatenate(
        [jnp.concatenate([w1, w2], axis=1),
         jnp.concatenate([w3, w4], axis=1)], axis=0)                  # (16, 6)
    bcat = jnp.concatenate([params["b1"] + params["b2"],
                            params["b4"]]).reshape(2 * COUT, 1)       # (16, 1)

    # ---- Kernel A: convs + relu + BN stats -------------------------------
    tpa = _tile(P, TP_A)
    v4, v8, mean, istd = pl.pallas_call(
        functools.partial(_conv_bn_stats_kernel, p_total=P, tp=tpa),
        out_shape=(jax.ShapeDtypeStruct((COUT, P), jnp.float32),
                   jax.ShapeDtypeStruct((COUT, P), jnp.float32),
                   jax.ShapeDtypeStruct((COUT, 1), jnp.float32),
                   jax.ShapeDtypeStruct((COUT, 1), jnp.float32)),
        grid=(pl.cdiv(P, tpa),),
        in_specs=[pl.BlockSpec((2 * CIN, tpa), lambda i: (0, i)),
                  pl.BlockSpec((2 * COUT, 2 * CIN), lambda i: (0, 0)),
                  pl.BlockSpec((2 * COUT, 1), lambda i: (0, 0))],
        out_specs=(pl.BlockSpec((COUT, tpa), lambda i: (0, i)),
                   pl.BlockSpec((COUT, tpa), lambda i: (0, i)),
                   pl.BlockSpec((COUT, 1), lambda i: (0, 0)),
                   pl.BlockSpec((COUT, 1), lambda i: (0, 0))),
        compiler_params=pltpu.CompilerParams(
            dimension_semantics=("arbitrary",)),
    )(xcat, wcat, bcat)

    # ---- Kernel B: v9 + s1 product ---------------------------------------
    tpb = _tile(P, TP_B)
    v9, m = pl.pallas_call(
        _bn_apply_s1_kernel,
        out_shape=(jax.ShapeDtypeStruct((COUT, P), jnp.float32),
                   jax.ShapeDtypeStruct((COUT * COUT, P), jnp.float32)),
        grid=(pl.cdiv(P, tpb),),
        in_specs=[pl.BlockSpec((COUT, tpb), lambda i: (0, i)),
                  pl.BlockSpec((COUT, tpb), lambda i: (0, i)),
                  pl.BlockSpec((COUT, 1), lambda i: (0, 0)),
                  pl.BlockSpec((COUT, 1), lambda i: (0, 0))],
        out_specs=(pl.BlockSpec((COUT, tpb), lambda i: (0, i)),
                   pl.BlockSpec((COUT * COUT, tpb), lambda i: (0, i))),
        compiler_params=pltpu.CompilerParams(
            dimension_semantics=("parallel",)),
    )(v4, v8, mean, istd)

    # torch: s2 = s1.reshape(n, k, -1).sum(-1) / k.  m's row-major flat order
    # equals s1's, so regroup into consecutive 64-element chunks.
    # TODO(synk): a fully fused B+C kernel could avoid materializing m in HBM,
    # but the 64-element chunks straddle (a, b) slab boundaries, so the
    # regroup is kept as one XLA reshape here.
    reg = m.reshape(P, COUT * COUT)

    # ---- Kernel C: chunk sum + div + tanh --------------------------------
    tqc = _tile(P, TQ_C)
    z2d = pl.pallas_call(
        functools.partial(_reduce_tanh_kernel, k=float(Wo)),
        out_shape=jax.ShapeDtypeStruct((P, 1), jnp.float32),
        grid=(pl.cdiv(P, tqc),),
        in_specs=[pl.BlockSpec((tqc, COUT * COUT), lambda i: (i, 0))],
        out_specs=pl.BlockSpec((tqc, 1), lambda i: (i, 0)),
        compiler_params=pltpu.CompilerParams(
            dimension_semantics=("parallel",)),
    )(reg)
    z = z2d.reshape(Ho, Wo)

    # (Cout, P) -> (1, Cout, Ho, Wo): pure reshape, no transpose.
    v8_nchw = v8.reshape(1, COUT, Ho, Wo)
    v9_nchw = v9.reshape(1, COUT, Ho, Wo)
    return v9_nchw, v8_nchw, z


# ----------------------------------------------------------------------------
# Pure-JAX reference (mirrors the PyTorch forward exactly)
# ----------------------------------------------------------------------------
def reference(x1, x2, p):
    def conv(x, w, b=None):
        y = lax.conv_general_dilated(x, w, (1, 1), ((1, 1), (1, 1)),
                                     dimension_numbers=("NCHW", "OIHW", "NCHW"))
        return y if b is None else y + b.reshape(1, -1, 1, 1)

    v1 = conv(x1, p["w1"], p["b1"])
    v2 = conv(x2, p["w2"], p["b2"])
    v3 = v1 + v2
    v4 = jnp.maximum(v3, 0.0)
    v6 = conv(x1, p["w3"])
    v7 = conv(x2, p["w4"], p["b4"])
    v8 = v6 + v7
    mean = v8.mean(axis=(0, 2, 3), keepdims=True)
    var = ((v8 - mean) ** 2).mean(axis=(0, 2, 3), keepdims=True)
    v9 = (v8 - mean) / jnp.sqrt(var + EPS)
    s1 = v4[None] * jnp.swapaxes(v9[None], 0, 2)
    n, k = s1.shape[-2:]
    s2 = s1.reshape(n, k, -1).sum(-1) / k
    return v9, v8, jnp.tanh(s2)


if __name__ == "__main__":
    key = jax.random.PRNGKey(0)
    kx1, kx2, kp = jax.random.split(key, 3)
    # SMALL shapes consistent with the module (module itself uses 1x3x224x224)
    x1 = jax.random.normal(kx1, (1, 3, 16, 16), jnp.float32)
    x2 = jax.random.normal(kx2, (1, 3, 16, 16), jnp.float32)
    params = init_params(kp)

    v9, v8, z = jax.block_until_ready(forward(x1, x2, params))
    rv9, rv8, rz = reference(x1, x2, params)

    assert v9.shape == (1, 8, 18, 18) and v8.shape == (1, 8, 18, 18)
    assert z.shape == (18, 18)
    assert jnp.allclose(v8, rv8, atol=1e-2, rtol=1e-2)
    assert jnp.allclose(v9, rv9, atol=1e-2, rtol=1e-2)
    assert jnp.allclose(z, rz, atol=1e-2, rtol=1e-2)

    # TODO(synk): BatchNorm running-stat buffer updates (training-mode side
    # effect of bn1/bn3) are not modeled; they do not affect returned tensors.
    print("KERNEL_OK")
</pallas_src>

<mosaic_0001>
module attributes {stable_mosaic.version = 11 : i64} {
  func.func @_conv_bn_stats_kernel(%arg0: i32, %arg1: memref<6x324xf32, #tpu.memory_space<vmem>>, %arg2: memref<16x6xf32, #tpu.memory_space<vmem>>, %arg3: memref<16x1xf32, #tpu.memory_space<vmem>>, %arg4: memref<8x324xf32, #tpu.memory_space<vmem>>, %arg5: memref<8x324xf32, #tpu.memory_space<vmem>>, %arg6: memref<8x1xf32, #tpu.memory_space<vmem>>, %arg7: memref<8x1xf32, #tpu.memory_space<vmem>>) attributes {dimension_semantics = [#tpu.dimension_semantics<arbitrary>], iteration_bounds = array<i64: 1>, scalar_prefetch = 0 : i64, scratch_operands = 0 : i64, tpu.core_type = #tpu.core_type<tc>, window_params = [{transform_indices = @transform_0, window_bounds = array<i64: 6, 324>}, {pipeline_mode = #tpu.pipeline_mode<synchronous>, transform_indices = @transform_1, window_bounds = array<i64: 16, 6>}, {pipeline_mode = #tpu.pipeline_mode<synchronous>, transform_indices = @transform_2, window_bounds = array<i64: 16, 1>}, {transform_indices = @transform_3, window_bounds = array<i64: 8, 324>}, {transform_indices = @transform_4, window_bounds = array<i64: 8, 324>}, {pipeline_mode = #tpu.pipeline_mode<synchronous>, transform_indices = @transform_5, window_bounds = array<i64: 8, 1>}, {pipeline_mode = #tpu.pipeline_mode<synchronous>, transform_indices = @transform_6, window_bounds = array<i64: 8, 1>}]} {
    %c0 = arith.constant 0 : index
    %c0_0 = arith.constant 0 : index
    %0 = vector.load %arg2[%c0, %c0_0] : memref<16x6xf32, #tpu.memory_space<vmem>>, vector<16x6xf32>
    %c0_1 = arith.constant 0 : index
    %c0_2 = arith.constant 0 : index
    %1 = vector.load %arg1[%c0_1, %c0_2] : memref<6x324xf32, #tpu.memory_space<vmem>>, vector<6x324xf32>
    %cst = arith.constant dense<0.000000e+00> : vector<16x324xf32>
    %2 = tpu.matmul %0, %1, %cst {dimension_numbers = #tpu.dot_dimension_numbers<[1], [0], [0], [1], [0, 0, 1, 1], [], []>} : vector<16x6xf32>, vector<6x324xf32>, vector<16x324xf32> -> vector<16x324xf32>
    %c0_3 = arith.constant 0 : index
    %c0_4 = arith.constant 0 : index
    %3 = vector.load %arg3[%c0_3, %c0_4] : memref<16x1xf32, #tpu.memory_space<vmem>>, vector<16x1xf32>
    %4 = vector.broadcast %3 : vector<16x1xf32> to vector<16x324xf32>
    %5 = arith.addf %2, %4 : vector<16x324xf32>
    %6 = vector.extract_strided_slice %5 {offsets = [0, 0], sizes = [8, 324], strides = [1, 1]} : vector<16x324xf32> to vector<8x324xf32>
    %7 = vector.extract_strided_slice %5 {offsets = [8, 0], sizes = [8, 324], strides = [1, 1]} : vector<16x324xf32> to vector<8x324xf32>
    %cst_5 = arith.constant 0.000000e+00 : f32
    %8 = vector.broadcast %cst_5 : f32 to vector<8x324xf32>
    %9 = arith.maximumf %6, %8 : vector<8x324xf32>
    %c0_6 = arith.constant 0 : index
    %c0_7 = arith.constant 0 : index
    %10 = vector.load %arg4[%c0_6, %c0_7] : memref<8x324xf32, #tpu.memory_space<vmem>>, vector<8x324xf32>
    tpu.vector_store %arg4[%c0_6, %c0_7], %9 {strides = array<i32>} : memref<8x324xf32, #tpu.memory_space<vmem>>, vector<8x324xf32>,
    %c0_8 = arith.constant 0 : index
    %c0_9 = arith.constant 0 : index
    %11 = vector.load %arg5[%c0_8, %c0_9] : memref<8x324xf32, #tpu.memory_space<vmem>>, vector<8x324xf32>
    tpu.vector_store %arg5[%c0_8, %c0_9], %7 {strides = array<i32>} : memref<8x324xf32, #tpu.memory_space<vmem>>, vector<8x324xf32>,
    %12 = tpu.iota {dimensions = array<i32: 1>} : vector<8x324xi32>
    %c324_i32 = arith.constant 324 : i32
    %13 = arith.muli %arg0, %c324_i32 : i32
    %c324_i32_10 = arith.constant 324 : i32
    %14 = arith.subi %c324_i32_10, %13 : i32
    %15 = vector.broadcast %14 : i32 to vector<8x324xi32>
    %16 = arith.cmpi slt, %12, %15 : vector<8x324xi32>
    %cst_11 = arith.constant 0.000000e+00 : f32
    %17 = vector.broadcast %cst_11 : f32 to vector<8x324xf32>
    %18 = arith.select %16, %7, %17 : vector<8x324xi1>, vector<8x324xf32>
    %cst_12 = arith.constant dense<0.000000e+00> : vector<8xf32>
    %19 = vector.multi_reduction <add>, %18, %cst_12 [1] : vector<8x324xf32> to vector<8xf32>
    %20 = vector.shape_cast %19 : vector<8xf32> to vector<8x1xf32>
    %21 = arith.mulf %18, %18 : vector<8x324xf32>
    %cst_13 = arith.constant dense<0.000000e+00> : vector<8xf32>
    %22 = vector.multi_reduction <add>, %21, %cst_13 [1] : vector<8x324xf32> to vector<8xf32>
    %23 = vector.shape_cast %22 : vector<8xf32> to vector<8x1xf32>
    %c0_i32 = arith.constant 0 : i32
    %24 = arith.cmpi eq, %arg0, %c0_i32 : i32
    %25 = arith.extui %24 : i1 to i32
    %c0_i32_14 = arith.constant 0 : i32
    %26 = arith.cmpi ne, %25, %c0_i32_14 : i32
    scf.if %26 {
      %cst_25 = arith.constant 0.000000e+00 : f32
      %36 = vector.broadcast %cst_25 : f32 to vector<8x1xf32>
      %c0_26 = arith.constant 0 : index
      %c0_27 = arith.constant 0 : index
      %37 = vector.load %arg6[%c0_26, %c0_27] : memref<8x1xf32, #tpu.memory_space<vmem>>, vector<8x1xf32>
      tpu.vector_store %arg6[%c0_26, %c0_27], %36 {strides = array<i32>} : memref<8x1xf32, #tpu.memory_space<vmem>>, vector<8x1xf32>,
      %cst_28 = arith.constant 0.000000e+00 : f32
      %38 = vector.broadcast %cst_28 : f32 to vector<8x1xf32>
      %c0_29 = arith.constant 0 : index
      %c0_30 = arith.constant 0 : index
      %39 = vector.load %arg7[%c0_29, %c0_30] : memref<8x1xf32, #tpu.memory_space<vmem>>, vector<8x1xf32>
      tpu.vector_store %arg7[%c0_29, %c0_30], %38 {strides = array<i32>} : memref<8x1xf32, #tpu.memory_space<vmem>>, vector<8x1xf32>,
    } else {
    }
    %c0_15 = arith.constant 0 : index
    %c0_16 = arith.constant 0 : index
    %27 = vector.load %arg6[%c0_15, %c0_16] : memref<8x1xf32, #tpu.memory_space<vmem>>, vector<8x1xf32>
    %28 = arith.addf %27, %20 : vector<8x1xf32>
    %c0_17 = arith.constant 0 : index
    %c0_18 = arith.constant 0 : index
    %29 = vector.load %arg6[%c0_17, %c0_18] : memref<8x1xf32, #tpu.memory_space<vmem>>, vector<8x1xf32>
    tpu.vector_store %arg6[%c0_17, %c0_18], %28 {strides = array<i32>} : memref<8x1xf32, #tpu.memory_space<vmem>>, vector<8x1xf32>,
    %c0_19 = arith.constant 0 : index
    %c0_20 = arith.constant 0 : index
    %30 = vector.load %arg7[%c0_19, %c0_20] : memref<8x1xf32, #tpu.memory_space<vmem>>, vector<8x1xf32>
    %31 = arith.addf %30, %23 : vector<8x1xf32>
    %c0_21 = arith.constant 0 : index
    %c0_22 = arith.constant 0 : index
    %32 = vector.load %arg7[%c0_21, %c0_22] : memref<8x1xf32, #tpu.memory_space<vmem>>, vector<8x1xf32>
    tpu.vector_store %arg7[%c0_21, %c0_22], %31 {strides = array<i32>} : memref<8x1xf32, #tpu.memory_space<vmem>>, vector<8x1xf32>,
    %c0_i32_23 = arith.constant 0 : i32
    %33 = arith.cmpi eq, %arg0, %c0_i32_23 : i32
    %34 = arith.extui %33 : i1 to i32
    %c0_i32_24 = arith.constant 0 : i32
    %35 = arith.cmpi ne, %34, %c0_i32_24 : i32
    scf.if %35 {
      %c0_25 = arith.constant 0 : index
      %c0_26 = arith.constant 0 : index
      %36 = vector.load %arg6[%c0_25, %c0_26] : memref<8x1xf32, #tpu.memory_space<vmem>>, vector<8x1xf32>
      %cst_27 = arith.constant 3.240000e+02 : f32
      %37 = vector.broadcast %cst_27 : f32 to vector<8x1xf32>
      %38 = arith.divf %36, %37 : vector<8x1xf32>
      %c0_28 = arith.constant 0 : index
      %c0_29 = arith.constant 0 : index
      %39 = vector.load %arg7[%c0_28, %c0_29] : memref<8x1xf32, #tpu.memory_space<vmem>>, vector<8x1xf32>
      %cst_30 = arith.constant 3.240000e+02 : f32
      %40 = vector.broadcast %cst_30 : f32 to vector<8x1xf32>
      %41 = arith.divf %39, %40 : vector<8x1xf32>
      %42 = arith.mulf %38, %38 : vector<8x1xf32>
      %43 = arith.subf %41, %42 : vector<8x1xf32>
      %c0_31 = arith.constant 0 : index
      %c0_32 = arith.constant 0 : index
      %44 = vector.load %arg6[%c0_31, %c0_32] : memref<8x1xf32, #tpu.memory_space<vmem>>, vector<8x1xf32>
      tpu.vector_store %arg6[%c0_31, %c0_32], %38 {strides = array<i32>} : memref<8x1xf32, #tpu.memory_space<vmem>>, vector<8x1xf32>,
      %cst_33 = arith.constant 9.99999974E-6 : f32
      %45 = vector.broadcast %cst_33 : f32 to vector<8x1xf32>
      %46 = arith.addf %43, %45 : vector<8x1xf32>
      %47 = math.rsqrt %46 : vector<8x1xf32>
      %c0_34 = arith.constant 0 : index
      %c0_35 = arith.constant 0 : index
      %48 = vector.load %arg7[%c0_34, %c0_35] : memref<8x1xf32, #tpu.memory_space<vmem>>, vector<8x1xf32>
      tpu.vector_store %arg7[%c0_34, %c0_35], %47 {strides = array<i32>} : memref<8x1xf32, #tpu.memory_space<vmem>>, vector<8x1xf32>,
    } else {
    }
    return
  }
  func.func @transform_0(%arg0: i32) -> (i32, i32) {
    %c0_i32 = arith.constant 0 : i32
    %c0_i32_0 = arith.constant 0 : i32
    return %c0_i32, %arg0 : i32, i32
  }
  func.func @transform_1(%arg0: i32) -> (i32, i32) {
    %c0_i32 = arith.constant 0 : i32
    %c0_i32_0 = arith.constant 0 : i32
    %c0_i32_1 = arith.constant 0 : i32
    return %c0_i32, %c0_i32_0 : i32, i32
  }
  func.func @transform_2(%arg0: i32) -> (i32, i32) {
    %c0_i32 = arith.constant 0 : i32
    %c0_i32_0 = arith.constant 0 : i32
    %c0_i32_1 = arith.constant 0 : i32
    return %c0_i32, %c0_i32_0 : i32, i32
  }
  func.func @transform_3(%arg0: i32) -> (i32, i32) {
    %c0_i32 = arith.constant 0 : i32
    %c0_i32_0 = arith.constant 0 : i32
    return %c0_i32, %arg0 : i32, i32
  }
  func.func @transform_4(%arg0: i32) -> (i32, i32) {
    %c0_i32 = arith.constant 0 : i32
    %c0_i32_0 = arith.constant 0 : i32
    return %c0_i32, %arg0 : i32, i32
  }
  func.func @transform_5(%arg0: i32) -> (i32, i32) {
    %c0_i32 = arith.constant 0 : i32
    %c0_i32_0 = arith.constant 0 : i32
    %c0_i32_1 = arith.constant 0 : i32
    return %c0_i32, %c0_i32_0 : i32, i32
  }
  func.func @transform_6(%arg0: i32) -> (i32, i32) {
    %c0_i32 = arith.constant 0 : i32
    %c0_i32_0 = arith.constant 0 : i32
    %c0_i32_1 = arith.constant 0 : i32
    return %c0_i32, %c0_i32_0 : i32, i32
  }
}

module attributes {stable_mosaic.version = 11 : i64} {
  func.func @_bn_apply_s1_kernel(%arg0: i32, %arg1: memref<8x324xf32, #tpu.memory_space<vmem>>, %arg2: memref<8x324xf32, #tpu.memory_space<vmem>>, %arg3: memref<8x1xf32, #tpu.memory_space<vmem>>, %arg4: memref<8x1xf32, #tpu.memory_space<vmem>>, %arg5: memref<8x324xf32, #tpu.memory_space<vmem>>, %arg6: memref<64x324xf32, #tpu.memory_space<vmem>>) attributes {dimension_semantics = [#tpu.dimension_semantics<parallel>], iteration_bounds = array<i64: 1>, scalar_prefetch = 0 : i64, scratch_operands = 0 : i64, tpu.core_type = #tpu.core_type<tc>, window_params = [{transform_indices = @transform_0, window_bounds = array<i64: 8, 324>}, {transform_indices = @transform_1, window_bounds = array<i64: 8, 324>}, {pipeline_mode = #tpu.pipeline_mode<synchronous>, transform_indices = @transform_2, window_bounds = array<i64: 8, 1>}, {pipeline_mode = #tpu.pipeline_mode<synchronous>, transform_indices = @transform_3, window_bounds = array<i64: 8, 1>}, {transform_indices = @transform_4, window_bounds = array<i64: 8, 324>}, {transform_indices = @transform_5, window_bounds = array<i64: 64, 324>}]} {
    %c0 = arith.constant 0 : index
    %c0_0 = arith.constant 0 : index
    %0 = vector.load %arg1[%c0, %c0_0] : memref<8x324xf32, #tpu.memory_space<vmem>>, vector<8x324xf32>
    %c0_1 = arith.constant 0 : index
    %c0_2 = arith.constant 0 : index
    %1 = vector.load %arg2[%c0_1, %c0_2] : memref<8x324xf32, #tpu.memory_space<vmem>>, vector<8x324xf32>
    %c0_3 = arith.constant 0 : index
    %c0_4 = arith.constant 0 : index
    %2 = vector.load %arg3[%c0_3, %c0_4] : memref<8x1xf32, #tpu.memory_space<vmem>>, vector<8x1xf32>
    %3 = vector.broadcast %2 : vector<8x1xf32> to vector<8x324xf32>
    %4 = arith.subf %1, %3 : vector<8x324xf32>
    %c0_5 = arith.constant 0 : index
    %c0_6 = arith.constant 0 : index
    %5 = vector.load %arg4[%c0_5, %c0_6] : memref<8x1xf32, #tpu.memory_space<vmem>>, vector<8x1xf32>
    %6 = vector.broadcast %5 : vector<8x1xf32> to vector<8x324xf32>
    %7 = arith.mulf %4, %6 : vector<8x324xf32>
    %c0_7 = arith.constant 0 : index
    %c0_8 = arith.constant 0 : index
    %8 = vector.load %arg5[%c0_7, %c0_8] : memref<8x324xf32, #tpu.memory_space<vmem>>, vector<8x324xf32>
    tpu.vector_store %arg5[%c0_7, %c0_8], %7 {strides = array<i32>} : memref<8x324xf32, #tpu.memory_space<vmem>>, vector<8x324xf32>,
    %9 = vector.extract_strided_slice %7 {offsets = [0, 0], sizes = [1, 324], strides = [1, 1]} : vector<8x324xf32> to vector<1x324xf32>
    %10 = vector.broadcast %9 : vector<1x324xf32> to vector<8x324xf32>
    %11 = arith.mulf %0, %10 : vector<8x324xf32>
    %c0_9 = arith.constant 0 : index
    %c0_10 = arith.constant 0 : index
    %12 = vector.load %arg6[%c0_9, %c0_10] : memref<64x324xf32, #tpu.memory_space<vmem>>, vector<8x324xf32>
    tpu.vector_store %arg6[%c0_9, %c0_10], %11 {strides = array<i32>} : memref<64x324xf32, #tpu.memory_space<vmem>>, vector<8x324xf32>,
    %13 = vector.extract_strided_slice %7 {offsets = [1, 0], sizes = [1, 324], strides = [1, 1]} : vector<8x324xf32> to vector<1x324xf32>
    %14 = vector.broadcast %13 : vector<1x324xf32> to vector<8x324xf32>
    %15 = arith.mulf %0, %14 : vector<8x324xf32>
    %c8 = arith.constant 8 : index
    %c0_11 = arith.constant 0 : index
    %16 = vector.load %arg6[%c8, %c0_11] : memref<64x324xf32, #tpu.memory_space<vmem>>, vector<8x324xf32>
    tpu.vector_store %arg6[%c8, %c0_11], %15 {strides = array<i32>} : memref<64x324xf32, #tpu.memory_space<vmem>>, vector<8x324xf32>,
    %17 = vector.extract_strided_slice %7 {offsets = [2, 0], sizes = [1, 324], strides = [1, 1]} : vector<8x324xf32> to vector<1x324xf32>
    %18 = vector.broadcast %17 : vector<1x324xf32> to vector<8x324xf32>
    %19 = arith.mulf %0, %18 : vector<8x324xf32>
    %c16 = arith.constant 16 : index
    %c0_12 = arith.constant 0 : index
    %20 = vector.load %arg6[%c16, %c0_12] : memref<64x324xf32, #tpu.memory_space<vmem>>, vector<8x324xf32>
    tpu.vector_store %arg6[%c16, %c0_12], %19 {strides = array<i32>} : memref<64x324xf32, #tpu.memory_space<vmem>>, vector<8x324xf32>,
    %21 = vector.extract_strided_slice %7 {offsets = [3, 0], sizes = [1, 324], strides = [1, 1]} : vector<8x324xf32> to vector<1x324xf32>
    %22 = vector.broadcast %21 : vector<1x324xf32> to vector<8x324xf32>
    %23 = arith.mulf %0, %22 : vector<8x324xf32>
    %c24 = arith.constant 24 : index
    %c0_13 = arith.constant 0 : index
    %24 = vector.load %arg6[%c24, %c0_13] : memref<64x324xf32, #tpu.memory_space<vmem>>, vector<8x324xf32>
    tpu.vector_store %arg6[%c24, %c0_13], %23 {strides = array<i32>} : memref<64x324xf32, #tpu.memory_space<vmem>>, vector<8x324xf32>,
    %25 = vector.extract_strided_slice %7 {offsets = [4, 0], sizes = [1, 324], strides = [1, 1]} : vector<8x324xf32> to vector<1x324xf32>
    %26 = vector.broadcast %25 : vector<1x324xf32> to vector<8x324xf32>
    %27 = arith.mulf %0, %26 : vector<8x324xf32>
    %c32 = arith.constant 32 : index
    %c0_14 = arith.constant 0 : index
    %28 = vector.load %arg6[%c32, %c0_14] : memref<64x324xf32, #tpu.memory_space<vmem>>, vector<8x324xf32>
    tpu.vector_store %arg6[%c32, %c0_14], %27 {strides = array<i32>} : memref<64x324xf32, #tpu.memory_space<vmem>>, vector<8x324xf32>,
    %29 = vector.extract_strided_slice %7 {offsets = [5, 0], sizes = [1, 324], strides = [1, 1]} : vector<8x324xf32> to vector<1x324xf32>
    %30 = vector.broadcast %29 : vector<1x324xf32> to vector<8x324xf32>
    %31 = arith.mulf %0, %30 : vector<8x324xf32>
    %c40 = arith.constant 40 : index
    %c0_15 = arith.constant 0 : index
    %32 = vector.load %arg6[%c40, %c0_15] : memref<64x324xf32, #tpu.memory_space<vmem>>, vector<8x324xf32>
    tpu.vector_store %arg6[%c40, %c0_15], %31 {strides = array<i32>} : memref<64x324xf32, #tpu.memory_space<vmem>>, vector<8x324xf32>,
    %33 = vector.extract_strided_slice %7 {offsets = [6, 0], sizes = [1, 324], strides = [1, 1]} : vector<8x324xf32> to vector<1x324xf32>
    %34 = vector.broadcast %33 : vector<1x324xf32> to vector<8x324xf32>
    %35 = arith.mulf %0, %34 : vector<8x324xf32>
    %c48 = arith.constant 48 : index
    %c0_16 = arith.constant 0 : index
    %36 = vector.load %arg6[%c48, %c0_16] : memref<64x324xf32, #tpu.memory_space<vmem>>, vector<8x324xf32>
    tpu.vector_store %arg6[%c48, %c0_16], %35 {strides = array<i32>} : memref<64x324xf32, #tpu.memory_space<vmem>>, vector<8x324xf32>,
    %37 = vector.extract_strided_slice %7 {offsets = [7, 0], sizes = [1, 324], strides = [1, 1]} : vector<8x324xf32> to vector<1x324xf32>
    %38 = vector.broadcast %37 : vector<1x324xf32> to vector<8x324xf32>
    %39 = arith.mulf %0, %38 : vector<8x324xf32>
    %c56 = arith.constant 56 : index
    %c0_17 = arith.constant 0 : index
    %40 = vector.load %arg6[%c56, %c0_17] : memref<64x324xf32, #tpu.memory_space<vmem>>, vector<8x324xf32>
    tpu.vector_store %arg6[%c56, %c0_17], %39 {strides = array<i32>} : memref<64x324xf32, #tpu.memory_space<vmem>>, vector<8x324xf32>,
    return
  }
  func.func @transform_0(%arg0: i32) -> (i32, i32) {
    %c0_i32 = arith.constant 0 : i32
    %c0_i32_0 = arith.constant 0 : i32
    return %c0_i32, %arg0 : i32, i32
  }
  func.func @transform_1(%arg0: i32) -> (i32, i32) {
    %c0_i32 = arith.constant 0 : i32
    %c0_i32_0 = arith.constant 0 : i32
    return %c0_i32, %arg0 : i32, i32
  }
  func.func @transform_2(%arg0: i32) -> (i32, i32) {
    %c0_i32 = arith.constant 0 : i32
    %c0_i32_0 = arith.constant 0 : i32
    %c0_i32_1 = arith.constant 0 : i32
    return %c0_i32, %c0_i32_0 : i32, i32
  }
  func.func @transform_3(%arg0: i32) -> (i32, i32) {
    %c0_i32 = arith.constant 0 : i32
    %c0_i32_0 = arith.constant 0 : i32
    %c0_i32_1 = arith.constant 0 : i32
    return %c0_i32, %c0_i32_0 : i32, i32
  }
  func.func @transform_4(%arg0: i32) -> (i32, i32) {
    %c0_i32 = arith.constant 0 : i32
    %c0_i32_0 = arith.constant 0 : i32
    return %c0_i32, %arg0 : i32, i32
  }
  func.func @transform_5(%arg0: i32) -> (i32, i32) {
    %c0_i32 = arith.constant 0 : i32
    %c0_i32_0 = arith.constant 0 : i32
    return %c0_i32, %arg0 : i32, i32
  }
}

module attributes {stable_mosaic.version = 11 : i64} {
  func.func @_reduce_tanh_kernel(%arg0: i32, %arg1: memref<324x64xf32, #tpu.memory_space<vmem>>, %arg2: memref<324x1xf32, #tpu.memory_space<vmem>>) attributes {dimension_semantics = [#tpu.dimension_semantics<parallel>], iteration_bounds = array<i64: 1>, scalar_prefetch = 0 : i64, scratch_operands = 0 : i64, tpu.core_type = #tpu.core_type<tc>, window_params = [{transform_indices = @transform_0, window_bounds = array<i64: 324, 64>}, {transform_indices = @transform_1, window_bounds = array<i64: 324, 1>}]} {
    %c0 = arith.constant 0 : index
    %c0_0 = arith.constant 0 : index
    %0 = vector.load %arg1[%c0, %c0_0] : memref<324x64xf32, #tpu.memory_space<vmem>>, vector<324x64xf32>
    %cst = arith.constant dense<0.000000e+00> : vector<324xf32>
    %1 = vector.multi_reduction <add>, %0, %cst [1] : vector<324x64xf32> to vector<324xf32>
    %2 = vector.shape_cast %1 : vector<324xf32> to vector<324x1xf32>
    %cst_1 = arith.constant 1.800000e+01 : f32
    %3 = vector.broadcast %cst_1 : f32 to vector<324x1xf32>
    %4 = arith.divf %2, %3 : vector<324x1xf32>
    %5 = math.tanh %4 : vector<324x1xf32>
    %c0_2 = arith.constant 0 : index
    %c0_3 = arith.constant 0 : index
    %6 = vector.load %arg2[%c0_2, %c0_3] : memref<324x1xf32, #tpu.memory_space<vmem>>, vector<324x1xf32>
    tpu.vector_store %arg2[%c0_2, %c0_3], %5 {strides = array<i32>} : memref<324x1xf32, #tpu.memory_space<vmem>>, vector<324x1xf32>,
    return
  }
  func.func @transform_0(%arg0: i32) -> (i32, i32) {
    %c0_i32 = arith.constant 0 : i32
    %c0_i32_0 = arith.constant 0 : i32
    return %arg0, %c0_i32 : i32, i32
  }
  func.func @transform_1(%arg0: i32) -> (i32, i32) {
    %c0_i32 = arith.constant 0 : i32
    %c0_i32_0 = arith.constant 0 : i32
    return %arg0, %c0_i32 : i32, i32
  }
}

</mosaic_0001>

<bundles_post_ra>
// kernel: forward.3
= control target key start
LH: loop header
LB: loop body
LE: loop exit
PB: predicated region body
PF: predicated region fallthrough
CT: control target
= control target key end

     0   :  { %vm42_vm0 = vcmask 1045504   ;;  %vm244_vm1 = vcmask 7168   ;;  %v305_v2 = vmov 0.0   ;;  %vm35_vm2 = vcmask 48128   ;;  %s429_s0 = inlined_call_operand.vmem [shape: f32[6,324], index: 0, kind: input, shape index: {}]   ;;  %s430_s5 = inlined_call_operand.vmem [shape: f32[8,1], index: 5, kind: output, shape index: {2}]   ;;  %s431_s6 = inlined_call_operand.vmem [shape: f32[8,1], index: 6, kind: output, shape index: {3}]   ;;  %s432_s1 = inlined_call_operand.vmem [shape: f32[16,6], index: 1, kind: input, shape index: {}]   ;;  %s433_s2 = inlined_call_operand.vmem [shape: f32[16,1], index: 2, kind: input, shape index: {}]   ;;  %s434_s4 = inlined_call_operand.vmem [shape: f32[8,324], index: 4, kind: output, shape index: {1}]   ;;  %s435_s3 = inlined_call_operand.vmem [shape: f32[8,324], index: 3, kind: output, shape index: {0}]  }
   0x1   :  { %v21_v0 = vld [vmem:[%s429_s0 + $0x8] sm:$0x3f]  ;;  %v20_v1 = vld [vmem:[%s429_s0] sm:$0x3f]  ;;  %116 = vmatprep.mubr.f32.mxu0 %v305_v2  ;;  %245 = vst.msk [vmem:[%s430_s5] sm:$0xff] %vm244_vm1, %v305_v2  ;;  %246 = vst.msk [vmem:[%s431_s6] sm:$0xff] %vm244_vm1, %v305_v2  ;;  %v214_v8 = vlaneseq }
   0x2   :  { %v18_v3 = vld [vmem:[%s432_s1] sm:$0xff]  ;;  %284 = vmatprep.subr.msk.mxu0 %vm42_vm0, %v21_v0  ;;  %v22_v4 = vld [vmem:[%s429_s0 + $0x10] sm:$0x3f]  ;;  %v19_v5 = vld [vmem:[%s432_s1 + $0x8] sm:$0xff]  ;;  %v306_v7 = vmov 0   ;;  %vm209_vm3 = vcmask 556032  }
   0x3   :  { %296 = vmatprep.mubr.msk.f32.mxu1 %vm35_vm2, %v18_v3  ;;  %285 = vmatpush1.msk.msra.mxu0 %vm42_vm0, %v20_v1  ;;  %v24_v6 = vld [vmem:[%s433_s2 + $0x8] sm:$0xff]  ;;  %v215_v9 = vand.u32 127, %v214_v8  ;;  %v23_v31 = vld [vmem:[%s433_s2] sm:$0xff] }
   0x4   :  { %294 = vmatprep.subr.msk.mxu1 %vm42_vm0, %v22_v4  ;;  %286 = vmatmul.mubr.msk.f32.vlgmr.msra.gmra.mrb[0].mxu0 %vm35_vm2, %v18_v3 }
   0x5   :  { %295 = vmatpush3.msk.msra.mxu1 %vm42_vm0, %v22_v4  ;;  %122 = vmatprep.mubr.f32.mxu0 %v305_v2  ;;  %v217_v10 = vadd.s32 256, %v215_v9 }
   0x6   :  { %297 = vmatmul.mubr.msk.f32.vlgmr.msra.gmra.mrb[0].mxu1 %vm35_vm2, %v19_v5  ;;  %301 = vset.pattern.permute.xlu0 %v306_v7 }
   0x7   :  { %302 = vset.pattern.permute.xlu1 %v306_v7  ;;  %32 = vperm.xlu0 %301, %v24_v6   ;;  %vm223_vm4 = vcmp.lt.s32.totalorder %v217_v10, 324 }
   0x8   :  { %287 = vmatmul.mubr.msk.f32.gmra.mrb[2].mxu0 %vm35_vm2, %v19_v5  ;;  %v247_v32 = vld [vmem:[%s430_s5] sm:$0xff] }
   0x9   :  { %v251_v34 = vld [vmem:[%s431_s6] sm:$0xff] }
  0x86   :  { %v33_v11 = vpop.permute.xlu0 %32 }
  0xd7   :  { %v118_v12 = vpop.f32.mrb[0].mxu0 }
  0xd8   :  { %v120_v13 = vpop.f32.mrb[1].mxu0 }
  0xd9   :  { %v298_v14 = vpop.f32.mrb[0].mxu1 }
  0xda   :  { %v201_v15 = vadd.f32 %v298_v14, %v33_v11  ;;  %v195_v16 = vpop.f32.mrb[1].mxu1 }
  0xdb   :  { %v124_v17 = vpop.f32.mrb[2].mxu0 }
  0xdc   :  { %213 = vst.msk [vmem:[%s434_s4 + $0x10] sm:$0xff] %vm209_vm3, %v201_v15  ;;  %v226_v18 = vsel %vm223_vm4, %v201_v15, 0.0  ;;  %v125_v19 = vadd.f32 %v124_v17, %v33_v11  ;;  %v126_v20 = vpop.f32.mrb[3].mxu0 }
  0xdd   :  { %v234_v21 = vmul.f32 %v226_v18, %v226_v18  ;;  %v127_v22 = vadd.f32 %v126_v20, %v33_v11  ;;  %v228_v23 = vsel %vm209_vm3, %v226_v18, 0.0 }
  0xde   :  { %211 = vst [vmem:[%s434_s4] sm:$0xff] %v125_v19  ;;  %v232_v24 = vmul.f32 %v125_v19, %v125_v19 }
  0xdf   :  { %212 = vst [vmem:[%s434_s4 + $0x8] sm:$0xff] %v127_v22  ;;  %v227_v25 = vadd.f32 %v127_v22, %v125_v19  ;;  %v233_v26 = vmul.f32 %v127_v22, %v127_v22  ;;  %v236_v27 = vsel %vm209_vm3, %v234_v21, 0.0 }
  0xe1   :  { %v229_v28 = vadd.f32 %v228_v23, %v227_v25  ;;  %v235_v29 = vadd.f32 %v233_v26, %v232_v24 }
  0xe3   :  { %230 = vadd.xlane.f32.xlu0 %v229_v28  ;;  %v237_v30 = vadd.f32 %v236_v27, %v235_v29 }
  0xe5   :  { %238 = vadd.xlane.f32.xlu1 %v237_v30 }
  0xf6   :  { %27 = vperm.xlu1 %302, %v23_v31  }
 0x170   :  { %v231_v33 = vpop.xlane.xlu0 %230 }
 0x171   :  { %v248_v35 = vadd.f32 %v247_v32, %v231_v33 }
 0x172   :  { %v239_v36 = vpop.xlane.xlu1 %238 }
 0x173   :  { %250 = vst.msk [vmem:[%s430_s5] sm:$0xff] %vm244_vm1, %v248_v35  ;;  %v252_v37 = vadd.f32 %v251_v34, %v239_v36 }
 0x175   :  { %253 = vst.msk [vmem:[%s431_s6] sm:$0xff] %vm244_vm1, %v252_v37 }
 0x176   :  { %v28_v38 = vpop.permute.xlu1 %27 }
 0x177   :  { %v119_v39 = vadd.f32 %v118_v12, %v28_v38  ;;  %v121_v40 = vadd.f32 %v120_v13, %v28_v38  ;;  %v196_v41 = vadd.f32 %v195_v16, %v28_v38 }
 0x179   :  { %v204_v42 = vmax.f32 %v119_v39, 0.0  ;;  %v205_v43 = vmax.f32 %v121_v40, 0.0  ;;  %v206_v44 = vmax.f32 %v196_v41, 0.0 }
 0x17a   :  { %v257_v45 = vld [vmem:[%s430_s5] sm:$0xff] }
 0x17b   :  { %v259_v46 = vmul.f32 0.0030864198, %v257_v45  ;;  %207 = vst [vmem:[%s435_s3] sm:$0xff] %v204_v42  ;;  %208 = vst [vmem:[%s435_s3 + $0x8] sm:$0xff] %v205_v43 }
 0x17c   :  { %210 = vst.msk [vmem:[%s435_s3 + $0x10] sm:$0xff] %vm209_vm3, %v206_v44  ;;  %v260_v47 = vld [vmem:[%s431_s6] sm:$0xff] }
 0x17d   :  { %v262_v48 = vmul.f32 %v259_v46, %v259_v46  ;;  %264 = vst.msk [vmem:[%s430_s5] sm:$0xff] %vm244_vm1, %v259_v46  ;;  %v261_v49 = vmul.f32 0.0030864198, %v260_v47 }
 0x17f   :  { %v263_v50 = vsub.f32 %v261_v49, %v262_v48 }
 0x181   :  { %v265_v51 = vadd.f32 1e-05, %v263_v50 }
 0x183   :  { %303 = vrsqrt.f32 %v265_v51 }
 0x18d   :  { %v304_v52 = vpop.eup %303 }
 0x18e   :  { %267 = vst.msk [vmem:[%s431_s6] sm:$0xff] %vm244_vm1, %v304_v52 }

// kernel: forward.4
= control target key start
LH: loop header
LB: loop body
LE: loop exit
PB: predicated region body
PF: predicated region fallthrough
CT: control target
= control target key end

     0   :  { %v201_v0 = vmov 0   ;;  %v47_v3 = vlaneseq  ;;  %vm45_vm0 = vcmask 556032   ;;  %s424_s2 = inlined_call_operand.vmem [shape: f32[8,1], index: 2, kind: input, shape index: {}]   ;;  %s425_s3 = inlined_call_operand.vmem [shape: f32[8,1], index: 3, kind: input, shape index: {}]   ;;  %s426_s1 = inlined_call_operand.vmem [shape: f32[8,324], index: 1, kind: input, shape index: {}]   ;;  %s427_s0 = inlined_call_operand.vmem [shape: f32[8,324], index: 0, kind: input, shape index: {}]   ;;  %s428_s4 = inlined_call_operand.vmem [shape: f32[8,324], index: 4, kind: output, shape index: {0}]   ;;  %s429_s5 = inlined_call_operand.vmem [shape: f32[64,324], index: 5, kind: output, shape index: {1}]  }
   0x1   :  { %200 = vset.pattern.permute.xlu0 %v201_v0  ;;  %v25_v1 = vld [vmem:[%s424_s2] sm:$0xff]  ;;  %v23_v7 = vld [vmem:[%s426_s1 + $0x8] sm:$0xff]  ;;  %v24_v8 = vld [vmem:[%s426_s1 + $0x10] sm:$0xff] }
   0x2   :  { %28 = vperm.xlu0 %200, %v25_v1   ;;  %v34_v2 = vld [vmem:[%s425_s3] sm:$0xff]  ;;  %v48_v4 = vshrl.u32 %v47_v3, 7  ;;  %v267_v25 = vld [vmem:[%s427_s0 + $0x8] sm:$0xff]  ;;  %v272_v26 = vld [vmem:[%s427_s0 + $0x10] sm:$0xff] }
   0x3   :  { %v22_v6 = vld [vmem:[%s426_s1] sm:$0xff] }
   0x4   :  { %v49_v9 = vsub.s32 0, %v48_v4  ;;  %v67_v13 = vsub.s32 1, %v48_v4  ;;  %v85_v14 = vsub.s32 2, %v48_v4  ;;  %v103_v16 = vsub.s32 3, %v48_v4  ;;  %v250_v17 = vld [vmem:[%s427_s0] sm:$0xff] }
   0x5   :  { %v121_v21 = vsub.s32 4, %v48_v4  ;;  %v258_v22 = vsub.s32 5, %v48_v4  ;;  %v260_v23 = vsub.s32 6, %v48_v4  ;;  %v262_v24 = vsub.s32 7, %v48_v4 }
   0x6   :  { %37 = vperm.xlu0 %200, %v34_v2  }
  0x81   :  { %v29_v5 = vpop.permute.xlu0 %28 }
  0x82   :  { %v31_v10 = vsub.f32 %v22_v6, %v29_v5  ;;  %v32_v11 = vsub.f32 %v23_v7, %v29_v5  ;;  %v33_v12 = vsub.f32 %v24_v8, %v29_v5 }
  0x85   :  { %v38_v15 = vpop.permute.xlu0 %37 }
  0x86   :  { %v252_v18 = vmul.f32 %v38_v15, %v31_v10  ;;  %v254_v19 = vmul.f32 %v38_v15, %v32_v11  ;;  %v256_v20 = vmul.f32 %v38_v15, %v33_v12 }
  0x88   :  { %43 = vst [vmem:[%s428_s4] sm:$0xff] %v252_v18  ;;  %44 = vst [vmem:[%s428_s4 + $0x8] sm:$0xff] %v254_v19  ;;  %v50_v27 = vrot.slane %v252_v18, %v49_v9  ;;  %v54_v28 = vrot.slane %v254_v19, %v49_v9  ;;  %v58_v29 = vrot.slane %v256_v20, %v49_v9 }
  0x89   :  { %46 = vst.msk [vmem:[%s428_s4 + $0x10] sm:$0xff] %vm45_vm0, %v256_v20  ;;  %v68_v30 = vrot.slane %v252_v18, %v67_v13  ;;  %v72_v31 = vrot.slane %v254_v19, %v67_v13  ;;  %v76_v32 = vrot.slane %v256_v20, %v67_v13  ;;  %v86_v33 = vrot.slane %v252_v18, %v85_v14 }
  0x8a   :  { %v90_v34 = vrot.slane %v254_v19, %v85_v14  ;;  %v59_v35 = vmul.f32 %v50_v27, %v250_v17  ;;  %v60_v36 = vmul.f32 %v54_v28, %v267_v25  ;;  %v61_v37 = vmul.f32 %v58_v29, %v272_v26 }
  0x8b   :  { %v77_v38 = vmul.f32 %v68_v30, %v250_v17  ;;  %v78_v39 = vmul.f32 %v72_v31, %v267_v25  ;;  %v79_v40 = vmul.f32 %v76_v32, %v272_v26  ;;  %v94_v41 = vrot.slane %v256_v20, %v85_v14 }
  0x8c   :  { %v95_v42 = vmul.f32 %v86_v33, %v250_v17  ;;  %62 = vst [vmem:[%s429_s5] sm:$0xff] %v59_v35  ;;  %63 = vst [vmem:[%s429_s5 + $0x8] sm:$0xff] %v60_v36  ;;  %v96_v43 = vmul.f32 %v90_v34, %v267_v25  ;;  %v104_v44 = vrot.slane %v252_v18, %v103_v16 }
  0x8d   :  { %64 = vst.msk [vmem:[%s429_s5 + $0x10] sm:$0xff] %vm45_vm0, %v61_v37  ;;  %80 = vst [vmem:[%s429_s5 + $0x18] sm:$0xff] %v77_v38  ;;  %v108_v45 = vrot.slane %v254_v19, %v103_v16  ;;  %v112_v46 = vrot.slane %v256_v20, %v103_v16  ;;  %v97_v47 = vmul.f32 %v94_v41, %v272_v26 }
  0x8e   :  { %81 = vst [vmem:[%s429_s5 + $0x20] sm:$0xff] %v78_v39  ;;  %82 = vst.msk [vmem:[%s429_s5 + $0x28] sm:$0xff] %vm45_vm0, %v79_v40  ;;  %v122_v48 = vrot.slane %v252_v18, %v121_v21  ;;  %v126_v49 = vrot.slane %v254_v19, %v121_v21  ;;  %v130_v50 = vrot.slane %v256_v20, %v121_v21 }
  0x8f   :  { %98 = vst [vmem:[%s429_s5 + $0x30] sm:$0xff] %v95_v42  ;;  %99 = vst [vmem:[%s429_s5 + $0x38] sm:$0xff] %v96_v43  ;;  %v113_v51 = vmul.f32 %v104_v44, %v250_v17  ;;  %v114_v52 = vmul.f32 %v108_v45, %v267_v25  ;;  %v115_v53 = vmul.f32 %v112_v46, %v272_v26 }
  0x90   :  { %v140_v54 = vrot.slane %v252_v18, %v258_v22  ;;  %100 = vst.msk [vmem:[%s429_s5 + $0x40] sm:$0xff] %vm45_vm0, %v97_v47  ;;  %v131_v55 = vmul.f32 %v122_v48, %v250_v17  ;;  %v132_v56 = vmul.f32 %v126_v49, %v267_v25  ;;  %v133_v57 = vmul.f32 %v130_v50, %v272_v26 }
  0x91   :  { %v144_v58 = vrot.slane %v254_v19, %v258_v22  ;;  %116 = vst [vmem:[%s429_s5 + $0x48] sm:$0xff] %v113_v51  ;;  %117 = vst [vmem:[%s429_s5 + $0x50] sm:$0xff] %v114_v52  ;;  %v148_v59 = vrot.slane %v256_v20, %v258_v22  ;;  %v158_v61 = vrot.slane %v252_v18, %v260_v23 }
  0x92   :  { %118 = vst.msk [vmem:[%s429_s5 + $0x58] sm:$0xff] %vm45_vm0, %v115_v53  ;;  %v149_v60 = vmul.f32 %v140_v54, %v250_v17  ;;  %v162_v62 = vrot.slane %v254_v19, %v260_v23  ;;  %134 = vst [vmem:[%s429_s5 + $0x60] sm:$0xff] %v131_v55  ;;  %v166_v0 = vrot.slane %v256_v20, %v260_v23 }
  0x93   :  { %135 = vst [vmem:[%s429_s5 + $0x68] sm:$0xff] %v132_v56  ;;  %136 = vst.msk [vmem:[%s429_s5 + $0x70] sm:$0xff] %vm45_vm0, %v133_v57  ;;  %v150_v63 = vmul.f32 %v144_v58, %v267_v25  ;;  %v176_v1 = vrot.slane %v252_v18, %v262_v24  ;;  %v180_v2 = vrot.slane %v254_v19, %v262_v24 }
  0x94   :  { %v151_v3 = vmul.f32 %v148_v59, %v272_v26  ;;  %152 = vst [vmem:[%s429_s5 + $0x78] sm:$0xff] %v149_v60  ;;  %v167_v4 = vmul.f32 %v158_v61, %v250_v17  ;;  %v168_v5 = vmul.f32 %v162_v62, %v267_v25  ;;  %v184_v6 = vrot.slane %v256_v20, %v262_v24 }
  0x95   :  { %153 = vst [vmem:[%s429_s5 + $0x80] sm:$0xff] %v150_v63  ;;  %v169_v7 = vmul.f32 %v166_v0, %v272_v26  ;;  %v185_v8 = vmul.f32 %v176_v1, %v250_v17  ;;  %v186_v9 = vmul.f32 %v180_v2, %v267_v25 }
  0x96   :  { %154 = vst.msk [vmem:[%s429_s5 + $0x88] sm:$0xff] %vm45_vm0, %v151_v3  ;;  %170 = vst [vmem:[%s429_s5 + $0x90] sm:$0xff] %v167_v4  ;;  %v187_v10 = vmul.f32 %v184_v6, %v272_v26 }
  0x97   :  { %171 = vst [vmem:[%s429_s5 + $0x98] sm:$0xff] %v168_v5  ;;  %172 = vst.msk [vmem:[%s429_s5 + $0xa0] sm:$0xff] %vm45_vm0, %v169_v7 }
  0x98   :  { %188 = vst [vmem:[%s429_s5 + $0xa8] sm:$0xff] %v185_v8  ;;  %189 = vst [vmem:[%s429_s5 + $0xb0] sm:$0xff] %v186_v9 }
  0x99   :  { %190 = vst.msk [vmem:[%s429_s5 + $0xb8] sm:$0xff] %vm45_vm0, %v187_v10 }

// kernel: forward.5
= control target key start
LH: loop header
LB: loop body
LE: loop exit
PB: predicated region body
PF: predicated region fallthrough
CT: control target
= control target key end

     0   :  { %vm49_vm0 = vcmask 523264   ;;  %vm170_vm1 = vcmask 519168   ;;  %vm257_vm2 = vcmask 7168   ;;  %vm298_vm3 = vcmask 3072   ;;  %s746_s0 = inlined_call_operand.vmem [shape: f32[324,64], index: 0, kind: input, shape index: {}]   ;;  %s747_s1 = inlined_call_operand.vmem [shape: f32[324,1], index: 1, kind: output, shape index: {}]  }
   0x1   :  { %v8_v0 = vld [vmem:[%s746_s0] sm:$0xff]  ;;  %v10_v1 = vld [vmem:[%s746_s0 + $0x10] sm:$0xff]  ;;  %v9_v2 = vld [vmem:[%s746_s0 + $0x8] sm:$0xff] }
   0x2   :  { %v50_v3 = vsel %vm49_vm0, %v8_v0, 0.0  ;;  %v56_v4 = vsel %vm49_vm0, %v10_v1, 0.0  ;;  %v11_v5 = vld [vmem:[%s746_s0 + $0x18] sm:$0xff]  ;;  %v53_v6 = vsel %vm49_vm0, %v9_v2, 0.0  ;;  %v12_v8 = vld [vmem:[%s746_s0 + $0x20] sm:$0xff]  ;;  %v13_v9 = vld [vmem:[%s746_s0 + $0x28] sm:$0xff] }
   0x3   :  { %51 = vadd.xlane.f32.xlu0 %v50_v3  ;;  %57 = vadd.xlane.f32.xlu1 %v56_v4  ;;  %v59_v7 = vsel %vm49_vm0, %v11_v5, 0.0  ;;  %v62_v10 = vsel %vm49_vm0, %v12_v8, 0.0  ;;  %v65_v11 = vsel %vm49_vm0, %v13_v9, 0.0  ;;  %v14_v12 = vld [vmem:[%s746_s0 + $0x30] sm:$0xff]  ;;  %v15_v13 = vld [vmem:[%s746_s0 + $0x38] sm:$0xff]  ;;  %v16_v14 = vld [vmem:[%s746_s0 + $0x40] sm:$0xff] }
   0x4   :  { %v17_v15 = vld [vmem:[%s746_s0 + $0x48] sm:$0xff]  ;;  %v40_v16 = vld [vmem:[%s746_s0 + $0x100] sm:$0xff]  ;;  %v68_v17 = vsel %vm49_vm0, %v14_v12, 0.0  ;;  %v71_v18 = vsel %vm49_vm0, %v15_v13, 0.0  ;;  %v42_v21 = vld [vmem:[%s746_s0 + $0x110] sm:$0xff]  ;;  %v74_v34 = vsel %vm49_vm0, %v16_v14, 0.0 }
   0x5   :  { %v438_v19 = vsel %vm49_vm0, %v40_v16, 0.0  ;;  %v41_v20 = vld [vmem:[%s746_s0 + $0x108] sm:$0xff]  ;;  %v43_v22 = vld [vmem:[%s746_s0 + $0x118] sm:$0xff]  ;;  %v453_v24 = vsel %vm49_vm0, %v42_v21, 0.0  ;;  %v44_v26 = vld [vmem:[%s746_s0 + $0x120] sm:$0xff]  ;;  %v77_v35 = vsel %vm49_vm0, %v17_v15, 0.0 }
   0x6   :  { %v450_v23 = vsel %vm49_vm0, %v41_v20, 0.0  ;;  %v456_v25 = vsel %vm49_vm0, %v43_v22, 0.0  ;;  %v45_v27 = vld [vmem:[%s746_s0 + $0x128] sm:$0xff]  ;;  %v46_v28 = vld [vmem:[%s746_s0 + $0x130] sm:$0xff]  ;;  %v468_v29 = vsel %vm49_vm0, %v44_v26, 0.0  ;;  %v47_v32 = vld [vmem:[%s746_s0 + $0x138] sm:$0xff] }
   0x7   :  { %54 = vadd.xlane.f32.xlu0 %v53_v6  ;;  %60 = vadd.xlane.f32.xlu1 %v59_v7  ;;  %v471_v30 = vsel %vm49_vm0, %v45_v27, 0.0  ;;  %v474_v31 = vsel %vm49_vm0, %v46_v28, 0.0  ;;  %v480_v33 = vsel %vm49_vm0, %v47_v32, 0.0  ;;  %v18_v36 = vld [vmem:[%s746_s0 + $0x50] sm:$0xff]  ;;  %v19_v37 = vld [vmem:[%s746_s0 + $0x58] sm:$0xff]  ;;  %v20_v40 = vld [vmem:[%s746_s0 + $0x60] sm:$0xff] }
   0x8   :  { %v80_v38 = vsel %vm49_vm0, %v18_v36, 0.0  ;;  %v83_v39 = vsel %vm49_vm0, %v19_v37, 0.0  ;;  %v21_v41 = vld [vmem:[%s746_s0 + $0x68] sm:$0xff]  ;;  %v86_v42 = vsel %vm49_vm0, %v20_v40, 0.0  ;;  %v22_v44 = vld [vmem:[%s746_s0 + $0x70] sm:$0xff]  ;;  %v23_v45 = vld [vmem:[%s746_s0 + $0x78] sm:$0xff] }
   0x9   :  { %v89_v43 = vsel %vm49_vm0, %v21_v41, 0.0  ;;  %v92_v46 = vsel %vm49_vm0, %v22_v44, 0.0  ;;  %v95_v47 = vsel %vm49_vm0, %v23_v45, 0.0  ;;  %v24_v48 = vld [vmem:[%s746_s0 + $0x80] sm:$0xff]  ;;  %v25_v49 = vld [vmem:[%s746_s0 + $0x88] sm:$0xff]  ;;  %v26_v52 = vld [vmem:[%s746_s0 + $0x90] sm:$0xff] }
   0xa   :  { %v98_v50 = vsel %vm49_vm0, %v24_v48, 0.0  ;;  %v101_v51 = vsel %vm49_vm0, %v25_v49, 0.0  ;;  %v27_v53 = vld [vmem:[%s746_s0 + $0x98] sm:$0xff]  ;;  %v104_v54 = vsel %vm49_vm0, %v26_v52, 0.0  ;;  %v28_v56 = vld [vmem:[%s746_s0 + $0xa0] sm:$0xff]  ;;  %v29_v57 = vld [vmem:[%s746_s0 + $0xa8] sm:$0xff] }
   0xb   :  { %63 = vadd.xlane.f32.xlu0 %v62_v10  ;;  %66 = vadd.xlane.f32.xlu1 %v65_v11  ;;  %v107_v55 = vsel %vm49_vm0, %v27_v53, 0.0  ;;  %v110_v58 = vsel %vm49_vm0, %v28_v56, 0.0  ;;  %v113_v59 = vsel %vm49_vm0, %v29_v57, 0.0  ;;  %v30_v60 = vld [vmem:[%s746_s0 + $0xb0] sm:$0xff]  ;;  %v31_v61 = vld [vmem:[%s746_s0 + $0xb8] sm:$0xff]  ;;  %v32_v0 = vld [vmem:[%s746_s0 + $0xc0] sm:$0xff] }
   0xc   :  { %v116_v62 = vsel %vm49_vm0, %v30_v60, 0.0  ;;  %v119_v63 = vsel %vm49_vm0, %v31_v61, 0.0  ;;  %v33_v1 = vld [vmem:[%s746_s0 + $0xc8] sm:$0xff]  ;;  %v122_v2 = vsel %vm49_vm0, %v32_v0, 0.0  ;;  %v34_v4 = vld [vmem:[%s746_s0 + $0xd0] sm:$0xff]  ;;  %v35_v5 = vld [vmem:[%s746_s0 + $0xd8] sm:$0xff] }
   0xd   :  { %v125_v3 = vsel %vm49_vm0, %v33_v1, 0.0  ;;  %v128_v6 = vsel %vm49_vm0, %v34_v4, 0.0  ;;  %v131_v7 = vsel %vm49_vm0, %v35_v5, 0.0  ;;  %v36_v8 = vld [vmem:[%s746_s0 + $0xe0] sm:$0xff]  ;;  %v37_v9 = vld [vmem:[%s746_s0 + $0xe8] sm:$0xff]  ;;  %v38_v12 = vld [vmem:[%s746_s0 + $0xf0] sm:$0xff] }
   0xe   :  { %v134_v10 = vsel %vm49_vm0, %v36_v8, 0.0  ;;  %v137_v11 = vsel %vm49_vm0, %v37_v9, 0.0  ;;  %v39_v13 = vld [vmem:[%s746_s0 + $0xf8] sm:$0xff]  ;;  %v140_v14 = vsel %vm49_vm0, %v38_v12, 0.0  ;;  %v48_v16 = vld [vmem:[%s746_s0 + $0x140] sm:$0xf] }
   0xf   :  { %69 = vadd.xlane.f32.xlu0 %v68_v17  ;;  %72 = vadd.xlane.f32.xlu1 %v71_v18  ;;  %v143_v15 = vsel %vm49_vm0, %v39_v13, 0.0  ;;  %v171_v17 = vsel %vm170_vm1, %v48_v16, 0.0 }
  0x13   :  { %75 = vadd.xlane.f32.xlu0 %v74_v34  ;;  %78 = vadd.xlane.f32.xlu1 %v77_v35 }
  0x17   :  { %81 = vadd.xlane.f32.xlu0 %v80_v38  ;;  %84 = vadd.xlane.f32.xlu1 %v83_v39 }
  0x1b   :  { %87 = vadd.xlane.f32.xlu0 %v86_v42  ;;  %90 = vadd.xlane.f32.xlu1 %v89_v43 }
  0x1f   :  { %93 = vadd.xlane.f32.xlu0 %v92_v46  ;;  %96 = vadd.xlane.f32.xlu1 %v95_v47 }
  0x23   :  { %99 = vadd.xlane.f32.xlu0 %v98_v50  ;;  %102 = vadd.xlane.f32.xlu1 %v101_v51 }
  0x27   :  { %105 = vadd.xlane.f32.xlu0 %v104_v54  ;;  %108 = vadd.xlane.f32.xlu1 %v107_v55 }
  0x2b   :  { %111 = vadd.xlane.f32.xlu0 %v110_v58  ;;  %114 = vadd.xlane.f32.xlu1 %v113_v59 }
  0x2f   :  { %117 = vadd.xlane.f32.xlu0 %v116_v62  ;;  %120 = vadd.xlane.f32.xlu1 %v119_v63 }
  0x33   :  { %123 = vadd.xlane.f32.xlu0 %v122_v2  ;;  %126 = vadd.xlane.f32.xlu1 %v125_v3 }
  0x37   :  { %129 = vadd.xlane.f32.xlu0 %v128_v6  ;;  %132 = vadd.xlane.f32.xlu1 %v131_v7 }
  0x3b   :  { %135 = vadd.xlane.f32.xlu0 %v134_v10  ;;  %138 = vadd.xlane.f32.xlu1 %v137_v11 }
  0x3f   :  { %141 = vadd.xlane.f32.xlu0 %v140_v14  ;;  %144 = vadd.xlane.f32.xlu1 %v143_v15 }
  0x43   :  { %147 = vadd.xlane.f32.xlu0 %v438_v19  ;;  %150 = vadd.xlane.f32.xlu1 %v450_v23 }
  0x47   :  { %153 = vadd.xlane.f32.xlu0 %v453_v24  ;;  %156 = vadd.xlane.f32.xlu1 %v456_v25 }
  0x4b   :  { %159 = vadd.xlane.f32.xlu0 %v468_v29  ;;  %162 = vadd.xlane.f32.xlu1 %v471_v30 }
  0x4f   :  { %165 = vadd.xlane.f32.xlu0 %v474_v31  ;;  %168 = vadd.xlane.f32.xlu1 %v480_v33 }
  0x53   :  { %172 = vadd.xlane.f32.xlu0 %v171_v17 }
  0x90   :  { %v52_v18 = vpop.xlane.xlu0 %51  ;;  %v58_v19 = vpop.xlane.xlu1 %57 }
  0x91   :  { %v175_v20 = vmul.f32 0.055555556, %v52_v18  ;;  %v177_v21 = vmul.f32 0.055555556, %v58_v19 }
  0x93   :  { %304 = vtanh.f32 %v175_v20 }
  0x94   :  { %306 = vtanh.f32 %v177_v21  ;;  %v55_v22 = vpop.xlane.xlu0 %54  ;;  %v61_v23 = vpop.xlane.xlu1 %60 }
  0x95   :  { %v176_v24 = vmul.f32 0.055555556, %v55_v22  ;;  %v178_v25 = vmul.f32 0.055555556, %v61_v23 }
  0x97   :  { %308 = vtanh.f32 %v176_v24 }
  0x98   :  { %310 = vtanh.f32 %v178_v25  ;;  %v64_v26 = vpop.xlane.xlu0 %63  ;;  %v67_v27 = vpop.xlane.xlu1 %66 }
  0x99   :  { %v179_v28 = vmul.f32 0.055555556, %v64_v26  ;;  %v180_v29 = vmul.f32 0.055555556, %v67_v27 }
  0x9b   :  { %312 = vtanh.f32 %v179_v28 }
  0x9c   :  { %314 = vtanh.f32 %v180_v29  ;;  %v70_v30 = vpop.xlane.xlu0 %69  ;;  %v73_v31 = vpop.xlane.xlu1 %72 }
  0x9d   :  { %v305_v32 = vpop.eup %304  ;;  %v181_v33 = vmul.f32 0.055555556, %v70_v30  ;;  %v182_v34 = vmul.f32 0.055555556, %v73_v31 }
  0x9e   :  { %v307_v35 = vpop.eup %306  ;;  %258 = vst.msk [vmem:[%s747_s1] sm:$0xff] %vm257_vm2, %v305_v32 }
  0x9f   :  { %260 = vst.msk [vmem:[%s747_s1 + $0x10] sm:$0xff] %vm257_vm2, %v307_v35  ;;  %316 = vtanh.f32 %v181_v33 }
  0xa0   :  { %318 = vtanh.f32 %v182_v34  ;;  %v76_v36 = vpop.xlane.xlu0 %75  ;;  %v79_v37 = vpop.xlane.xlu1 %78 }
  0xa1   :  { %v309_v38 = vpop.eup %308  ;;  %v183_v39 = vmul.f32 0.055555556, %v76_v36  ;;  %v184_v40 = vmul.f32 0.055555556, %v79_v37 }
  0xa2   :  { %v311_v41 = vpop.eup %310  ;;  %259 = vst.msk [vmem:[%s747_s1 + $0x8] sm:$0xff] %vm257_vm2, %v309_v38 }
  0xa3   :  { %261 = vst.msk [vmem:[%s747_s1 + $0x18] sm:$0xff] %vm257_vm2, %v311_v41  ;;  %320 = vtanh.f32 %v183_v39 }
  0xa4   :  { %322 = vtanh.f32 %v184_v40  ;;  %v82_v42 = vpop.xlane.xlu0 %81  ;;  %v85_v43 = vpop.xlane.xlu1 %84 }
  0xa5   :  { %v313_v44 = vpop.eup %312  ;;  %v185_v45 = vmul.f32 0.055555556, %v82_v42  ;;  %v186_v46 = vmul.f32 0.055555556, %v85_v43 }
  0xa6   :  { %v315_v47 = vpop.eup %314  ;;  %262 = vst.msk [vmem:[%s747_s1 + $0x20] sm:$0xff] %vm257_vm2, %v313_v44 }
  0xa7   :  { %263 = vst.msk [vmem:[%s747_s1 + $0x28] sm:$0xff] %vm257_vm2, %v315_v47  ;;  %324 = vtanh.f32 %v185_v45 }
  0xa8   :  { %326 = vtanh.f32 %v186_v46  ;;  %v88_v48 = vpop.xlane.xlu0 %87  ;;  %v91_v49 = vpop.xlane.xlu1 %90 }
  0xa9   :  { %v317_v50 = vpop.eup %316  ;;  %v187_v51 = vmul.f32 0.055555556, %v88_v48  ;;  %v188_v52 = vmul.f32 0.055555556, %v91_v49 }
  0xaa   :  { %v319_v53 = vpop.eup %318  ;;  %264 = vst.msk [vmem:[%s747_s1 + $0x30] sm:$0xff] %vm257_vm2, %v317_v50 }
  0xab   :  { %265 = vst.msk [vmem:[%s747_s1 + $0x38] sm:$0xff] %vm257_vm2, %v319_v53  ;;  %328 = vtanh.f32 %v187_v51 }
  0xac   :  { %330 = vtanh.f32 %v188_v52  ;;  %v94_v54 = vpop.xlane.xlu0 %93  ;;  %v97_v55 = vpop.xlane.xlu1 %96 }
  0xad   :  { %v321_v56 = vpop.eup %320  ;;  %v189_v57 = vmul.f32 0.055555556, %v94_v54  ;;  %v190_v58 = vmul.f32 0.055555556, %v97_v55 }
  0xae   :  { %v323_v59 = vpop.eup %322  ;;  %266 = vst.msk [vmem:[%s747_s1 + $0x40] sm:$0xff] %vm257_vm2, %v321_v56 }
  0xaf   :  { %267 = vst.msk [vmem:[%s747_s1 + $0x48] sm:$0xff] %vm257_vm2, %v323_v59  ;;  %332 = vtanh.f32 %v189_v57 }
  0xb0   :  { %334 = vtanh.f32 %v190_v58  ;;  %v100_v60 = vpop.xlane.xlu0 %99  ;;  %v103_v61 = vpop.xlane.xlu1 %102 }
  0xb1   :  { %v325_v62 = vpop.eup %324  ;;  %v191_v63 = vmul.f32 0.055555556, %v100_v60  ;;  %v192_v0 = vmul.f32 0.055555556, %v103_v61 }
  0xb2   :  { %v327_v1 = vpop.eup %326  ;;  %268 = vst.msk [vmem:[%s747_s1 + $0x50] sm:$0xff] %vm257_vm2, %v325_v62 }
  0xb3   :  { %269 = vst.msk [vmem:[%s747_s1 + $0x58] sm:$0xff] %vm257_vm2, %v327_v1  ;;  %336 = vtanh.f32 %v191_v63 }
  0xb4   :  { %338 = vtanh.f32 %v192_v0  ;;  %v106_v2 = vpop.xlane.xlu0 %105  ;;  %v109_v3 = vpop.xlane.xlu1 %108 }
  0xb5   :  { %v329_v4 = vpop.eup %328  ;;  %v193_v5 = vmul.f32 0.055555556, %v106_v2  ;;  %v194_v6 = vmul.f32 0.055555556, %v109_v3 }
  0xb6   :  { %v331_v7 = vpop.eup %330  ;;  %270 = vst.msk [vmem:[%s747_s1 + $0x60] sm:$0xff] %vm257_vm2, %v329_v4 }
  0xb7   :  { %271 = vst.msk [vmem:[%s747_s1 + $0x68] sm:$0xff] %vm257_vm2, %v331_v7  ;;  %340 = vtanh.f32 %v193_v5 }
  0xb8   :  { %342 = vtanh.f32 %v194_v6  ;;  %v112_v8 = vpop.xlane.xlu0 %111  ;;  %v115_v9 = vpop.xlane.xlu1 %114 }
  0xb9   :  { %v333_v10 = vpop.eup %332  ;;  %v195_v11 = vmul.f32 0.055555556, %v112_v8  ;;  %v196_v12 = vmul.f32 0.055555556, %v115_v9 }
  0xba   :  { %v335_v13 = vpop.eup %334  ;;  %272 = vst.msk [vmem:[%s747_s1 + $0x70] sm:$0xff] %vm257_vm2, %v333_v10 }
  0xbb   :  { %273 = vst.msk [vmem:[%s747_s1 + $0x78] sm:$0xff] %vm257_vm2, %v335_v13  ;;  %344 = vtanh.f32 %v195_v11 }
  0xbc   :  { %346 = vtanh.f32 %v196_v12  ;;  %v118_v14 = vpop.xlane.xlu0 %117  ;;  %v121_v15 = vpop.xlane.xlu1 %120 }
  0xbd   :  { %v337_v16 = vpop.eup %336  ;;  %v197_v17 = vmul.f32 0.055555556, %v118_v14  ;;  %v198_v18 = vmul.f32 0.055555556, %v121_v15 }
  0xbe   :  { %v339_v19 = vpop.eup %338  ;;  %274 = vst.msk [vmem:[%s747_s1 + $0x80] sm:$0xff] %vm257_vm2, %v337_v16 }
  0xbf   :  { %275 = vst.msk [vmem:[%s747_s1 + $0x88] sm:$0xff] %vm257_vm2, %v339_v19  ;;  %348 = vtanh.f32 %v197_v17 }
  0xc0   :  { %350 = vtanh.f32 %v198_v18  ;;  %v124_v20 = vpop.xlane.xlu0 %123  ;;  %v127_v21 = vpop.xlane.xlu1 %126 }
  0xc1   :  { %v341_v22 = vpop.eup %340  ;;  %v199_v23 = vmul.f32 0.055555556, %v124_v20  ;;  %v200_v24 = vmul.f32 0.055555556, %v127_v21 }
  0xc2   :  { %v343_v25 = vpop.eup %342  ;;  %276 = vst.msk [vmem:[%s747_s1 + $0x90] sm:$0xff] %vm257_vm2, %v341_v22 }
  0xc3   :  { %277 = vst.msk [vmem:[%s747_s1 + $0x98] sm:$0xff] %vm257_vm2, %v343_v25  ;;  %352 = vtanh.f32 %v199_v23 }
  0xc4   :  { %354 = vtanh.f32 %v200_v24  ;;  %v130_v26 = vpop.xlane.xlu0 %129  ;;  %v133_v27 = vpop.xlane.xlu1 %132 }
  0xc5   :  { %v345_v28 = vpop.eup %344  ;;  %v201_v29 = vmul.f32 0.055555556, %v130_v26  ;;  %v202_v30 = vmul.f32 0.055555556, %v133_v27 }
  0xc6   :  { %v347_v31 = vpop.eup %346  ;;  %278 = vst.msk [vmem:[%s747_s1 + $0xa0] sm:$0xff] %vm257_vm2, %v345_v28 }
  0xc7   :  { %279 = vst.msk [vmem:[%s747_s1 + $0xa8] sm:$0xff] %vm257_vm2, %v347_v31  ;;  %356 = vtanh.f32 %v201_v29 }
  0xc8   :  { %358 = vtanh.f32 %v202_v30  ;;  %v136_v32 = vpop.xlane.xlu0 %135  ;;  %v139_v33 = vpop.xlane.xlu1 %138 }
  0xc9   :  { %v349_v34 = vpop.eup %348  ;;  %v203_v35 = vmul.f32 0.055555556, %v136_v32  ;;  %v204_v36 = vmul.f32 0.055555556, %v139_v33 }
  0xca   :  { %v351_v37 = vpop.eup %350  ;;  %280 = vst.msk [vmem:[%s747_s1 + $0xb0] sm:$0xff] %vm257_vm2, %v349_v34 }
  0xcb   :  { %281 = vst.msk [vmem:[%s747_s1 + $0xb8] sm:$0xff] %vm257_vm2, %v351_v37  ;;  %360 = vtanh.f32 %v203_v35 }
  0xcc   :  { %362 = vtanh.f32 %v204_v36  ;;  %v142_v38 = vpop.xlane.xlu0 %141  ;;  %v145_v39 = vpop.xlane.xlu1 %144 }
  0xcd   :  { %v353_v40 = vpop.eup %352  ;;  %v205_v41 = vmul.f32 0.055555556, %v142_v38  ;;  %v206_v42 = vmul.f32 0.055555556, %v145_v39 }
  0xce   :  { %v355_v43 = vpop.eup %354  ;;  %282 = vst.msk [vmem:[%s747_s1 + $0xc0] sm:$0xff] %vm257_vm2, %v353_v40 }
  0xcf   :  { %283 = vst.msk [vmem:[%s747_s1 + $0xc8] sm:$0xff] %vm257_vm2, %v355_v43  ;;  %364 = vtanh.f32 %v205_v41 }
  0xd0   :  { %366 = vtanh.f32 %v206_v42  ;;  %v148_v44 = vpop.xlane.xlu0 %147  ;;  %v151_v45 = vpop.xlane.xlu1 %150 }
  0xd1   :  { %v357_v46 = vpop.eup %356  ;;  %v207_v47 = vmul.f32 0.055555556, %v148_v44  ;;  %v208_v48 = vmul.f32 0.055555556, %v151_v45 }
  0xd2   :  { %v359_v49 = vpop.eup %358  ;;  %284 = vst.msk [vmem:[%s747_s1 + $0xd0] sm:$0xff] %vm257_vm2, %v357_v46 }
  0xd3   :  { %285 = vst.msk [vmem:[%s747_s1 + $0xd8] sm:$0xff] %vm257_vm2, %v359_v49  ;;  %368 = vtanh.f32 %v207_v47 }
  0xd4   :  { %370 = vtanh.f32 %v208_v48  ;;  %v154_v50 = vpop.xlane.xlu0 %153  ;;  %v157_v51 = vpop.xlane.xlu1 %156 }
  0xd5   :  { %v361_v52 = vpop.eup %360  ;;  %v209_v53 = vmul.f32 0.055555556, %v154_v50  ;;  %v210_v54 = vmul.f32 0.055555556, %v157_v51 }
  0xd6   :  { %v363_v55 = vpop.eup %362  ;;  %286 = vst.msk [vmem:[%s747_s1 + $0xe0] sm:$0xff] %vm257_vm2, %v361_v52 }
  0xd7   :  { %287 = vst.msk [vmem:[%s747_s1 + $0xe8] sm:$0xff] %vm257_vm2, %v363_v55  ;;  %372 = vtanh.f32 %v209_v53 }
  0xd8   :  { %374 = vtanh.f32 %v210_v54  ;;  %v160_v56 = vpop.xlane.xlu0 %159  ;;  %v163_v57 = vpop.xlane.xlu1 %162 }
  0xd9   :  { %v365_v58 = vpop.eup %364  ;;  %v211_v59 = vmul.f32 0.055555556, %v160_v56  ;;  %v212_v60 = vmul.f32 0.055555556, %v163_v57 }
  0xda   :  { %v367_v61 = vpop.eup %366  ;;  %288 = vst.msk [vmem:[%s747_s1 + $0xf0] sm:$0xff] %vm257_vm2, %v365_v58 }
  0xdb   :  { %289 = vst.msk [vmem:[%s747_s1 + $0xf8] sm:$0xff] %vm257_vm2, %v367_v61  ;;  %376 = vtanh.f32 %v211_v59 }
  0xdc   :  { %378 = vtanh.f32 %v212_v60  ;;  %v166_v62 = vpop.xlane.xlu0 %165  ;;  %v169_v63 = vpop.xlane.xlu1 %168 }
  0xdd   :  { %v369_v0 = vpop.eup %368  ;;  %v213_v1 = vmul.f32 0.055555556, %v166_v62  ;;  %v214_v2 = vmul.f32 0.055555556, %v169_v63 }
  0xde   :  { %v371_v3 = vpop.eup %370  ;;  %290 = vst.msk [vmem:[%s747_s1 + $0x100] sm:$0xff] %vm257_vm2, %v369_v0 }
  0xdf   :  { %291 = vst.msk [vmem:[%s747_s1 + $0x108] sm:$0xff] %vm257_vm2, %v371_v3  ;;  %380 = vtanh.f32 %v213_v1 }
  0xe0   :  { %382 = vtanh.f32 %v214_v2  ;;  %v173_v4 = vpop.xlane.xlu0 %172 }
  0xe1   :  { %v373_v5 = vpop.eup %372  ;;  %v215_v6 = vmul.f32 0.055555556, %v173_v4 }
  0xe2   :  { %v375_v7 = vpop.eup %374  ;;  %292 = vst.msk [vmem:[%s747_s1 + $0x110] sm:$0xff] %vm257_vm2, %v373_v5 }
  0xe3   :  { %293 = vst.msk [vmem:[%s747_s1 + $0x118] sm:$0xff] %vm257_vm2, %v375_v7  ;;  %384 = vtanh.f32 %v215_v6 }
  0xe5   :  { %v377_v8 = vpop.eup %376 }
  0xe6   :  { %v379_v9 = vpop.eup %378  ;;  %294 = vst.msk [vmem:[%s747_s1 + $0x120] sm:$0xff] %vm257_vm2, %v377_v8 }
  0xe7   :  { %295 = vst.msk [vmem:[%s747_s1 + $0x128] sm:$0xff] %vm257_vm2, %v379_v9 }
  0xe9   :  { %v381_v10 = vpop.eup %380 }
  0xea   :  { %v383_v11 = vpop.eup %382  ;;  %296 = vst.msk [vmem:[%s747_s1 + $0x130] sm:$0xff] %vm257_vm2, %v381_v10 }
  0xeb   :  { %297 = vst.msk [vmem:[%s747_s1 + $0x138] sm:$0xff] %vm257_vm2, %v383_v11 }
  0xed   :  { %v385_v12 = vpop.eup %384 }
  0xee   :  { %299 = vst.msk [vmem:[%s747_s1 + $0x140] sm:$0xf] %vm298_vm3, %v385_v12 }

</bundles_post_ra>
